<compile_context>
chip_gen: v7x
topology: tpu7x:2x2x1
jax: 0.10.0
libtpu: 0.0.40
codegen_flags: <defaults>
</compile_context>

<pallas_src>
import jax
import jax.numpy as jnp
from jax.experimental import pallas as pl
from jax.experimental.pallas import tpu as pltpu

_LANE = 128
_SUBLANE = 8


def _triplet_loss_kernel(n_ref, margin_ref, dp_ref, dn_ref, out_ref, acc_ref):
    # n_ref      : (1,) int32 SMEM  -- number of valid (unpadded) flat elements
    # margin_ref : (1,) f32  SMEM
    # dp_ref/dn_ref : (tile_r, 128) VMEM tiles (f32 or bf16)
    # out_ref    : (8, 128) f32 block -- per-split partial column sums
    # acc_ref    : (8, 128) f32 scratch, resident across the reduction axis
    i = pl.program_id(1)

    @pl.when(i == 0)
    def _init():
        acc_ref[...] = jnp.zeros_like(acc_ref)

    tile_r, lane = dp_ref.shape
    assert tile_r % _SUBLANE == 0  # guaranteed by the wrapper
    tile_elems = tile_r * lane
    n = n_ref[0]

    # Logical (un-clamped) tile index -> flat element offset of this tile.
    logical_tile = pl.program_id(0) * pl.num_programs(1) + i
    tile_start = logical_tile * tile_elems

    def _accumulate(vals):
        # Reduce the tile to (8, 128) column sums, then a single
        # read-modify-write of the tiny accumulator.
        acc_ref[...] += vals.reshape(-1, _SUBLANE, _LANE).sum(axis=0)

    # Skip tiles that are entirely past the valid range (clamped duplicates
    # created when total_blocks does not divide evenly across splits).
    @pl.when(tile_start < n)
    def _compute():
        dp = dp_ref[...].astype(jnp.float32)
        dn = dn_ref[...].astype(jnp.float32)
        losses = jnp.maximum(dp - dn + margin_ref[0], jnp.float32(0.0))

        # Steady-state path: tile is entirely valid -> no mask work at all.
        @pl.when(tile_start + tile_elems <= n)
        def _full_tile():
            _accumulate(losses)

        # Ragged tail (at most one tile per split): mask padded / garbage
        # elements via a flat-index compare.
        @pl.when(tile_start + tile_elems > n)
        def _tail_tile():
            row = jax.lax.broadcasted_iota(jnp.int32, (tile_r, lane), 0)
            col = jax.lax.broadcasted_iota(jnp.int32, (tile_r, lane), 1)
            flat_idx = tile_start + row * lane + col
            _accumulate(jnp.where(flat_idx < n, losses, jnp.float32(0.0)))

    @pl.when(i == pl.num_programs(1) - 1)
    def _finalize():
        out_ref[...] = acc_ref[...]


def _prep(x):
    x = jnp.asarray(x)
    # Keep bf16 as bf16 (halves its HBM read traffic); everything else -> f32.
    if x.dtype not in (jnp.dtype(jnp.bfloat16), jnp.dtype(jnp.float32)):
        x = x.astype(jnp.float32)
    return x.reshape(-1)


def _sublane_rows(dtype):
    # Sub-32-bit dtypes pack along sublanes: min tile height 8 * (4 / itemsize).
    return _SUBLANE * max(1, 4 // jnp.dtype(dtype).itemsize)


def triplet_loss(distance_positive, distance_negative, margin,
                 *, num_splits=2, max_tile_rows=8192, vmem_limit_bytes=None):
    """Pallas-TPU implementation of TripletLoss.forward (returns f32 scalar).

    max_tile_rows=8192 -> 4 MiB f32 tiles: 2 inputs x 2 pipeline buffers = 16
    MiB of input buffering plus a 4 KiB accumulator; vmem_limit_bytes is set
    explicitly (with headroom for elementwise temps) so this also fits v5e's
    smaller default scoped-VMEM budget.  num_splits=2 splits the row
    reduction across v7x's two TensorCores and auto-degrades to 1 when the
    input is a single block.
    """
    dp = _prep(distance_positive)
    dn = _prep(distance_negative)
    if dp.shape != dn.shape:
        raise ValueError("distance tensors must have the same shape")

    n = dp.shape[0]
    if n == 0:
        return jnp.float32(0.0)

    sub = max(_sublane_rows(dp.dtype), _sublane_rows(dn.dtype))
    rows = pl.cdiv(n, _LANE)

    tile_r_cap = max(sub, (max_tile_rows // sub) * sub)
    if rows <= tile_r_cap:
        # Single tile: round the slab height up to the sublane multiple so the
        # in-kernel (., 8, 128) reduction is always legal (tiny pad, masked).
        rows = pl.cdiv(rows, sub) * sub
        tile_r = rows
    else:
        tile_r = tile_r_cap

    padded = rows * _LANE
    if padded != n:
        # Only when the flat length is not a lane/sublane multiple; padded
        # values are masked in-kernel so their contents are irrelevant.
        dp = jnp.pad(dp, (0, padded - n))
        dn = jnp.pad(dn, (0, padded - n))
    dp2 = dp.reshape(rows, _LANE)
    dn2 = dn.reshape(rows, _LANE)

    total_blocks = pl.cdiv(rows, tile_r)
    num_splits = max(1, min(num_splits, total_blocks))
    blocks_per_split = pl.cdiv(total_blocks, num_splits)

    # Tail mask uses int32 flat indices.
    if num_splits * blocks_per_split * tile_r * _LANE >= 2 ** 31:
        raise ValueError("input too large for int32 flat indexing in triplet_loss")

    def data_index_map(s, i):
        # Clamp for DMA safety; out-of-range logical tiles are skipped in-kernel.
        return (jnp.minimum(s * blocks_per_split + i, total_blocks - 1), 0)

    if vmem_limit_bytes is None:
        buf_bytes = 2 * tile_r * _LANE * (dp2.dtype.itemsize + dn2.dtype.itemsize)
        vmem_limit_bytes = min(buf_bytes + (24 << 20), 48 << 20)

    n_arr = jnp.array([n], dtype=jnp.int32)
    margin_arr = jnp.full((1,), margin, dtype=jnp.float32)

    out = pl.pallas_call(
        _triplet_loss_kernel,
        out_shape=jax.ShapeDtypeStruct((num_splits * _SUBLANE, _LANE),
                                       jnp.float32),
        grid=(num_splits, blocks_per_split),
        in_specs=[
            pl.BlockSpec(memory_space=pltpu.MemorySpace.SMEM),  # n
            pl.BlockSpec(memory_space=pltpu.MemorySpace.SMEM),  # margin
            pl.BlockSpec((tile_r, _LANE), data_index_map),
            pl.BlockSpec((tile_r, _LANE), data_index_map),
        ],
        out_specs=pl.BlockSpec((_SUBLANE, _LANE), lambda s, i: (s, 0)),
        scratch_shapes=[pltpu.VMEM((_SUBLANE, _LANE), jnp.float32)],
        compiler_params=pltpu.CompilerParams(
            dimension_semantics=("parallel", "arbitrary"),
            vmem_limit_bytes=int(vmem_limit_bytes)),
    )(n_arr, margin_arr, dp2, dn2)

    # Each split's (8, 128) block holds that split's partial column sums.
    return jnp.sum(out)


def _reference(dp, dn, margin):
    return jnp.sum(jax.nn.relu(jnp.asarray(dp, jnp.float32)
                               - jnp.asarray(dn, jnp.float32)
                               + jnp.float32(margin)))


if __name__ == "__main__":
    margin = 0.2
    key = jax.random.PRNGKey(0)
    k1, k2, k3, k4, k5, k6 = jax.random.split(key, 6)

    # Check 1: tiny batch, matching the PyTorch module's typical use
    # (one scalar distance per sample).  Single-block path, split degraded to 1.
    dp_small = jax.random.uniform(k1, (8,), dtype=jnp.float32)
    dn_small = jax.random.uniform(k2, (8,), dtype=jnp.float32)
    loss = jax.block_until_ready(triplet_loss(dp_small, dn_small, margin))
    ref = _reference(dp_small, dn_small, margin)
    assert jnp.allclose(loss, ref, atol=1e-5, rtol=1e-5), (loss, ref)

    # Check 2: lane-ragged multi-dim input with a tiny tile cap so the
    # multi-block grid, 2-way split, clamped-duplicate skip and masked tail
    # tile are all exercised.
    dp_big = jax.random.uniform(k3, (3, 1000), dtype=jnp.float32)
    dn_big = jax.random.uniform(k4, (3, 1000), dtype=jnp.float32)
    loss2 = jax.block_until_ready(
        triplet_loss(dp_big, dn_big, margin, max_tile_rows=8))
    ref2 = _reference(dp_big, dn_big, margin)
    assert jnp.allclose(loss2, ref2, atol=1e-4, rtol=1e-5), (loss2, ref2)

    # Check 3: mixed bf16 / f32 inputs -- bf16 stays bf16 on the wire, the
    # kernel upcasts per-tile; exercises the 16-row sublane alignment path
    # and a sublane-ragged last block.
    dp_bf = jax.random.uniform(k5, (40, 128), dtype=jnp.float32).astype(jnp.bfloat16)
    dn_f32 = jax.random.uniform(k6, (40, 128), dtype=jnp.float32)
    loss3 = jax.block_until_ready(
        triplet_loss(dp_bf, dn_f32, margin, max_tile_rows=16))
    ref3 = _reference(dp_bf, dn_f32, margin)
    assert jnp.allclose(loss3, ref3, atol=1e-2, rtol=1e-4), (loss3, ref3)

    print("KERNEL_OK")
</pallas_src>

<mosaic_0001>
module attributes {stable_mosaic.version = 11 : i64} {
  func.func @_triplet_loss_kernel(%arg0: i32, %arg1: i32, %arg2: memref<1xi32, #tpu.memory_space<smem>>, %arg3: memref<1xf32, #tpu.memory_space<smem>>, %arg4: memref<8x128xf32, #tpu.memory_space<vmem>>, %arg5: memref<8x128xf32, #tpu.memory_space<vmem>>, %arg6: memref<8x128xf32, #tpu.memory_space<vmem>>, %arg7: memref<8x128xf32, #tpu.memory_space<vmem>>) attributes {dimension_semantics = [#tpu.dimension_semantics<parallel>, #tpu.dimension_semantics<arbitrary>], iteration_bounds = array<i64: 1, 1>, scalar_prefetch = 0 : i64, scratch_operands = 1 : i64, tpu.core_type = #tpu.core_type<tc>, window_params = [{transform_indices = @transform_0, window_bounds = array<i64: 1>}, {transform_indices = @transform_1, window_bounds = array<i64: 1>}, {transform_indices = @transform_2, window_bounds = array<i64: 8, 128>}, {transform_indices = @transform_3, window_bounds = array<i64: 8, 128>}, {transform_indices = @transform_4, window_bounds = array<i64: 8, 128>}]} {
    %c0_i32 = arith.constant 0 : i32
    %0 = arith.cmpi eq, %arg1, %c0_i32 : i32
    %1 = arith.extui %0 : i1 to i32
    %c0_i32_0 = arith.constant 0 : i32
    %2 = arith.cmpi ne, %1, %c0_i32_0 : i32
    scf.if %2 {
      %cst = arith.constant 0.000000e+00 : f32
      %13 = vector.broadcast %cst : f32 to vector<8x128xf32>
      %c0_4 = arith.constant 0 : index
      %c0_5 = arith.constant 0 : index
      %14 = vector.load %arg7[%c0_4, %c0_5] : memref<8x128xf32, #tpu.memory_space<vmem>>, vector<8x128xf32>
      tpu.vector_store %arg7[%c0_4, %c0_5], %13 {strides = array<i32>} : memref<8x128xf32, #tpu.memory_space<vmem>>, vector<8x128xf32>,
    } else {
    }
    %c0 = arith.constant 0 : index
    %3 = memref.load %arg2[%c0] : memref<1xi32, #tpu.memory_space<smem>>
    %c1_i32 = arith.constant 1 : i32
    %4 = arith.muli %arg0, %c1_i32 : i32
    %5 = arith.addi %4, %arg1 : i32
    %c1024_i32 = arith.constant 1024 : i32
    %6 = arith.muli %5, %c1024_i32 : i32
    %7 = arith.cmpi slt, %6, %3 : i32
    %8 = arith.extui %7 : i1 to i32
    %c0_i32_1 = arith.constant 0 : i32
    %9 = arith.cmpi ne, %8, %c0_i32_1 : i32
    scf.if %9 {
      %c0_4 = arith.constant 0 : index
      %c0_5 = arith.constant 0 : index
      %13 = vector.load %arg4[%c0_4, %c0_5] : memref<8x128xf32, #tpu.memory_space<vmem>>, vector<8x128xf32>
      %c0_6 = arith.constant 0 : index
      %c0_7 = arith.constant 0 : index
      %14 = vector.load %arg5[%c0_6, %c0_7] : memref<8x128xf32, #tpu.memory_space<vmem>>, vector<8x128xf32>
      %15 = arith.subf %13, %14 : vector<8x128xf32>
      %c0_8 = arith.constant 0 : index
      %16 = memref.load %arg3[%c0_8] : memref<1xf32, #tpu.memory_space<smem>>
      %17 = vector.broadcast %16 : f32 to vector<8x128xf32>
      %18 = arith.addf %15, %17 : vector<8x128xf32>
      %cst = arith.constant 0.000000e+00 : f32
      %19 = vector.broadcast %cst : f32 to vector<8x128xf32>
      %20 = arith.maximumf %18, %19 : vector<8x128xf32>
      %c1024_i32_9 = arith.constant 1024 : i32
      %21 = arith.addi %6, %c1024_i32_9 : i32
      %22 = arith.cmpi sle, %21, %3 : i32
      %23 = arith.extui %22 : i1 to i32
      %c0_i32_10 = arith.constant 0 : i32
      %24 = arith.cmpi ne, %23, %c0_i32_10 : i32
      scf.if %24 {
        %c0_13 = arith.constant 0 : index
        %c0_14 = arith.constant 0 : index
        %29 = vector.load %arg7[%c0_13, %c0_14] : memref<8x128xf32, #tpu.memory_space<vmem>>, vector<8x128xf32>
        %30 = vector.shape_cast %20 : vector<8x128xf32> to vector<1x8x128xf32>
        %cst_15 = arith.constant dense<0.000000e+00> : vector<8x128xf32>
        %31 = vector.multi_reduction <add>, %30, %cst_15 [0] : vector<1x8x128xf32> to vector<8x128xf32>
        %32 = arith.addf %29, %31 : vector<8x128xf32>
        %c0_16 = arith.constant 0 : index
        %c0_17 = arith.constant 0 : index
        %33 = vector.load %arg7[%c0_16, %c0_17] : memref<8x128xf32, #tpu.memory_space<vmem>>, vector<8x128xf32>
        tpu.vector_store %arg7[%c0_16, %c0_17], %32 {strides = array<i32>} : memref<8x128xf32, #tpu.memory_space<vmem>>, vector<8x128xf32>,
      } else {
      }
      %c1024_i32_11 = arith.constant 1024 : i32
      %25 = arith.addi %6, %c1024_i32_11 : i32
      %26 = arith.cmpi sgt, %25, %3 : i32
      %27 = arith.extui %26 : i1 to i32
      %c0_i32_12 = arith.constant 0 : i32
      %28 = arith.cmpi ne, %27, %c0_i32_12 : i32
      scf.if %28 {
        %29 = tpu.iota {dimensions = array<i32: 0>} : vector<8x128xi32>
        %30 = tpu.iota {dimensions = array<i32: 1>} : vector<8x128xi32>
        %c128_i32 = arith.constant 128 : i32
        %31 = vector.broadcast %c128_i32 : i32 to vector<8x128xi32>
        %32 = arith.muli %29, %31 : vector<8x128xi32>
        %33 = vector.broadcast %6 : i32 to vector<8x128xi32>
        %34 = arith.addi %33, %32 : vector<8x128xi32>
        %35 = arith.addi %34, %30 : vector<8x128xi32>
        %36 = vector.broadcast %3 : i32 to vector<8x128xi32>
        %37 = arith.cmpi slt, %35, %36 : vector<8x128xi32>
        %cst_13 = arith.constant 0.000000e+00 : f32
        %38 = vector.broadcast %cst_13 : f32 to vector<8x128xf32>
        %39 = arith.select %37, %20, %38 : vector<8x128xi1>, vector<8x128xf32>
        %c0_14 = arith.constant 0 : index
        %c0_15 = arith.constant 0 : index
        %40 = vector.load %arg7[%c0_14, %c0_15] : memref<8x128xf32, #tpu.memory_space<vmem>>, vector<8x128xf32>
        %41 = vector.shape_cast %39 : vector<8x128xf32> to vector<1x8x128xf32>
        %cst_16 = arith.constant dense<0.000000e+00> : vector<8x128xf32>
        %42 = vector.multi_reduction <add>, %41, %cst_16 [0] : vector<1x8x128xf32> to vector<8x128xf32>
        %43 = arith.addf %40, %42 : vector<8x128xf32>
        %c0_17 = arith.constant 0 : index
        %c0_18 = arith.constant 0 : index
        %44 = vector.load %arg7[%c0_17, %c0_18] : memref<8x128xf32, #tpu.memory_space<vmem>>, vector<8x128xf32>
        tpu.vector_store %arg7[%c0_17, %c0_18], %43 {strides = array<i32>} : memref<8x128xf32, #tpu.memory_space<vmem>>, vector<8x128xf32>,
      } else {
      }
    } else {
    }
    %c0_i32_2 = arith.constant 0 : i32
    %10 = arith.cmpi eq, %arg1, %c0_i32_2 : i32
    %11 = arith.extui %10 : i1 to i32
    %c0_i32_3 = arith.constant 0 : i32
    %12 = arith.cmpi ne, %11, %c0_i32_3 : i32
    scf.if %12 {
      %c0_4 = arith.constant 0 : index
      %c0_5 = arith.constant 0 : index
      %13 = vector.load %arg7[%c0_4, %c0_5] : memref<8x128xf32, #tpu.memory_space<vmem>>, vector<8x128xf32>
      %c0_6 = arith.constant 0 : index
      %c0_7 = arith.constant 0 : index
      %14 = vector.load %arg6[%c0_6, %c0_7] : memref<8x128xf32, #tpu.memory_space<vmem>>, vector<8x128xf32>
      tpu.vector_store %arg6[%c0_6, %c0_7], %13 {strides = array<i32>} : memref<8x128xf32, #tpu.memory_space<vmem>>, vector<8x128xf32>,
    } else {
    }
    return
  }
  func.func @transform_0(%arg0: i32, %arg1: i32) -> i32 {
    %c0_i32 = arith.constant 0 : i32
    %c0_i32_0 = arith.constant 0 : i32
    return %c0_i32 : i32
  }
  func.func @transform_1(%arg0: i32, %arg1: i32) -> i32 {
    %c0_i32 = arith.constant 0 : i32
    %c0_i32_0 = arith.constant 0 : i32
    return %c0_i32 : i32
  }
  func.func @transform_2(%arg0: i32, %arg1: i32) -> (i32, i32) {
    %c1_i32 = arith.constant 1 : i32
    %0 = arith.muli %arg0, %c1_i32 : i32
    %1 = arith.addi %0, %arg1 : i32
    %c0_i32 = arith.constant 0 : i32
    %2 = arith.minsi %1, %c0_i32 : i32
    %c0_i32_0 = arith.constant 0 : i32
    %c0_i32_1 = arith.constant 0 : i32
    return %2, %c0_i32_0 : i32, i32
  }
  func.func @transform_3(%arg0: i32, %arg1: i32) -> (i32, i32) {
    %c1_i32 = arith.constant 1 : i32
    %0 = arith.muli %arg0, %c1_i32 : i32
    %1 = arith.addi %0, %arg1 : i32
    %c0_i32 = arith.constant 0 : i32
    %2 = arith.minsi %1, %c0_i32 : i32
    %c0_i32_0 = arith.constant 0 : i32
    %c0_i32_1 = arith.constant 0 : i32
    return %2, %c0_i32_0 : i32, i32
  }
  func.func @transform_4(%arg0: i32, %arg1: i32) -> (i32, i32) {
    %c0_i32 = arith.constant 0 : i32
    %c0_i32_0 = arith.constant 0 : i32
    return %arg0, %c0_i32 : i32, i32
  }
}

</mosaic_0001>

<bundles_post_ra>
// kernel: tpu_custom_call.1
= control target key start
LH: loop header
LB: loop body
LE: loop exit
PB: predicated region body
PF: predicated region fallthrough
CT: control target
= control target key end

     0   :  { %s269_s0 = inlined_call_operand.<no memory space> [shape: s32[1], index: 0, kind: input, shape index: {}]   ;;  %s270_s1 = inlined_call_operand.<no memory space> [shape: f32[1], index: 1, kind: input, shape index: {}]   ;;  %s271_s2 = inlined_call_operand.hbm [shape: f32[8,128], index: 2, kind: input, shape index: {}]   ;;  %s272_s3 = inlined_call_operand.vmem [shape: f32[8,128], index: 3, kind: input, shape index: {}]   ;;  %s273_s4 = inlined_call_operand.hbm [shape: f32[8,128], index: 4, kind: output, shape index: {}]  }
   0x1   :  { %10 = sst [smem:[#allocation4]] %s270_s1 }
   0x2   :  { %11 = vsyncpa [#allocation6], 0 }
   0x3   :  { %12 = vsyncpa [#allocation7], 0  ;;  %s199_s17 = smov [#allocation5]   ;;  %s151_s21 = scalar_lea.hbm %s271_s2, 128 }
   0x4   :  { %s28_s18 = sshll.u32 %s199_s17, 4  ;;  %p152_p0 = scmp.ne.s32.totalorder %s271_s2, %s151_s21  ;;  %s29_s18 = int_to_ptr.vmem [resolvable:$true] %s28_s18 }
   0x5   :  { %p155_p1 = scmp.lt.u32.totalorder %s151_s21, %s271_s2 }
   0x7   :  { %p157_p2 = pnand %p155_p1, %p152_p0 }
   0x9   :  { %160 = shalt.err (!%p157_p2)
}
   0xa   :  { %s161_s1 = scalar_lea.vmem %s29_s18, 128  ;;  %p166_p4 = scmp.lt.s32.totalorder %s29_s18, %s29_s18 }
   0xb   :  { %p162_p3 = scmp.ne.s32.totalorder %s29_s18, %s161_s1  ;;  %p167_p5 = scmp.lt.s32.totalorder %s161_s1, %s161_s1 }
   0xd   :  { %p168_p6 = por %p167_p5, %p166_p4 }
   0xf   :  { %p169_p7 = pnand %p168_p6, %p162_p3 }
  0x11   :  { %172 = shalt.err (!%p169_p7)
}
  0x12   :  { %31 = dma.hbm_to_vmem [thread:$0]  %s271_s2, 128, %s29_s18, [#allocation6]  }
  0x13   :  { %195 = dma.done.wait [#allocation6], 128  }
  0x14   :  { %196 = vsyncadd [#allocation6], 4294967168  ;;  %v200_v0 = vmov 0.0   ;;  %p143_p8 = scmp.le.s32.totalorder %s269_s0, 0 }
  0x15   :  { %71 = vst [vmem:[#allocation2] sm:$0xff] %v200_v0  ;;  %v79_v1 = vld [vmem:[#allocation5] sm:$0xff] (!%p143_p8)  ;;  %v80_v2 = vld [vmem:[%s272_s3] sm:$0xff] (!%p143_p8)  ;;  %s82_s6 = sld [smem:[#allocation4]] (!%p143_p8)  ;;  %p145_p9 = scmp.lt.s32.totalorder (!%p143_p8), %s269_s0, 1024 }
  0x16   :  { %78 = sbr.rel (%p143_p8) target bundleno = 50 (0x32), region = 29  ;;  %v81_v3 = vsub.f32 (!%p143_p8), %v79_v1, %v80_v2 }
  0x1b   :  { %v83_v4 = vstv (!%p143_p8), %s82_s6 }
  0x1c   :  { %v84_v5 = vadd.f32 (!%p143_p8), %v83_v4, %v81_v3 }
  0x1d   :  { %90 = sbr.rel (%p145_p9) target bundleno = 36 (0x24), region = 33  ;;  %v91_v7 = vld [vmem:[#allocation2] sm:$0xff] (!%p145_p9) }
  0x1e   :  { %v85_v6 = vmax.f32 %v84_v5, 0.0 }
  0x20   :  { %v93_v8 = vadd.f32 (!%p145_p9), %v91_v7, %v85_v6 }
  0x22   :  { %94 = vst [vmem:[#allocation2] sm:$0xff] (!%p145_p9), %v93_v8 }
  0x24 PF:  { %p147_p10 = scmp.ge.s32.totalorder %s269_s0, 1024 }
  0x25   :  { %v99_v9 = vlaneseq (!%p147_p10)  ;;  %v107_v13 = vstv (!%p147_p10), %s269_s0 }
  0x26   :  { %98 = sbr.rel (%p147_p10) target bundleno = 50 (0x32), region = 37 }
  0x27   :  { %v100_v10 = vshrl.u32 (!%p147_p10), %v99_v9, 7  ;;  %v102_v11 = vand.u32 (!%p147_p10), 127, %v99_v9 }
  0x29   :  { %v103_v12 = vmul.u32 (!%p147_p10), 128, %v100_v10  ;;  %v110_v15 = vld [vmem:[#allocation2] sm:$0xff] (!%p147_p10) }
  0x2b   :  { %v106_v14 = vadd.s32 (!%p147_p10), %v103_v12, %v102_v11 }
  0x2d   :  { %vm108_vm0 = vcmp.lt.s32.totalorder %v106_v14, %v107_v13 }
  0x2e   :  { %v109_v16 = vsel %vm108_vm0, %v85_v6, 0.0 }
  0x2f   :  { %v112_v17 = vadd.f32 %v110_v15, %v109_v16 }
  0x31   :  { %113 = vst [vmem:[#allocation2] sm:$0xff] %v112_v17 }
  0x32 PF:  { %s201_s11 = smov [#allocation8]  }
  0x33   :  { %s125_s12 = sshll.u32 %s201_s11, 4  ;;  %s126_s12 = int_to_ptr.vmem [resolvable:$true] %s125_s12 }
  0x34   :  { %s173_s13 = scalar_lea.vmem %s126_s12, 128  ;;  %p178_p12 = scmp.lt.s32.totalorder %s126_s12, %s126_s12 }
  0x35   :  { %p174_p11 = scmp.ne.s32.totalorder %s126_s12, %s173_s13  ;;  %p179_p13 = scmp.lt.s32.totalorder %s173_s13, %s173_s13 }
  0x37   :  { %p180_p0 = por %p179_p13, %p178_p12 }
  0x38   :  { %v117_v18 = vld [vmem:[#allocation2] sm:$0xff] }
  0x39   :  { %118 = vst [vmem:[#allocation8] sm:$0xff] %v117_v18  ;;  %p181_p1 = pnand %p180_p0, %p174_p11 }
  0x3b   :  { %184 = shalt.err (!%p181_p1)
}
  0x3c   :  { %s185_s15 = scalar_lea.hbm %s273_s4, 128 }
  0x3d   :  { %p186_p2 = scmp.ne.s32.totalorder %s273_s4, %s185_s15  ;;  %p189_p3 = scmp.lt.u32.totalorder %s185_s15, %s273_s4 }
  0x3f   :  { %p191_p4 = pnand %p189_p3, %p186_p2 }
  0x41   :  { %194 = shalt.err (!%p191_p4)
}
  0x42   :  { %128 = dma.vmem_to_hbm [thread:$0]  %s126_s12, 128, %s273_s4, [#allocation7]  }
  0x43   :  { %197 = dma.done.wait [#allocation7], 128  }
  0x44   :  { %198 = vsyncadd [#allocation7], 4294967168 }
  0x45   :  { %132 = vsyncpa [#allocation6], 1 }
  0x46   :  { %133 = vsyncpa [#allocation7], 1 }

</bundles_post_ra>
